<compile_context>
chip_gen: v7x
topology: tpu7x:2x2x1
jax: 0.10.0
libtpu: 0.0.40
codegen_flags: <defaults>
</compile_context>

<pallas_src>
import functools

import jax
import jax.numpy as jnp
from jax import lax
from jax.experimental import pallas as pl
from jax.experimental.pallas import tpu as pltpu


def _round_up(x, m):
    return (x + m - 1) // m * m


def _pick_batch_block(n, cin_p, cout, hw, bytes_budget=8 << 20):
    """Images per grid step: as many as fit a conservative VMEM budget."""
    per_img = (cin_p * hw * 4          # f32 activation (wide)
               + 9 * cin_p * hw * 2    # bf16 im2col buffer (dominant)
               + (cin_p + cout) * hw * 4)  # f32 output block
    b = max(1, min(n, bytes_budget // max(per_img, 1)))
    while n % b:                       # keep the grid evenly divisible
        b -= 1
    return int(b)


def _pick_vmem_limit():
    """Scoped-VMEM limit with headroom (BlockSpec double-buffers every block)."""
    try:
        cap = pltpu.get_tpu_info().vmem_capacity_bytes
    except Exception:
        cap = 64 * 1024 * 1024
    return int(min(100 * 1024 * 1024, (cap * 3) // 4))


def dense_layer_kernel(x_ref, scale_ref, shift_ref, masks_ref, w_ref, out_ref,
                       *, img_w):
    # x_ref:     (B, Cin, H*W)        B images, channels-first, spatial flattened
    # scale_ref: (Cin, 1)             folded BN scale = gamma / sqrt(var + eps)
    # shift_ref: (Cin, 1)             folded BN shift = beta - mean * scale
    # masks_ref: (9, B*H*W)           per-tap validity masks (conv zero padding)
    # w_ref:     (Cout, 9*Cin_p)      bf16 weights, column = (dy*3+dx)*Cin_p + ci
    # out_ref:   (B, Cin+Cout, H*W)   fused dense-connection output
    b_imgs, cin, hw = x_ref.shape
    cin_p = w_ref.shape[1] // 9
    lanes = b_imgs * hw

    scale = scale_ref[...]                       # (Cin, 1)
    shift = shift_ref[...]                       # (Cin, 1)
    masks = masks_ref[...]                       # (9, lanes)

    # Lane-concatenate the B images, then BN (folded affine) + ReLU in f32.
    if b_imgs > 1:
        x_wide = jnp.concatenate([x_ref[b] for b in range(b_imgs)], axis=1)
    else:
        x_wide = x_ref[0]                        # (Cin, lanes)
    act = jnp.maximum(x_wide * scale + shift, 0.0)

    # Pad channel rows to the tile-aligned Cin_p (zero rows x zero weights).
    if cin_p != cin:
        act = jnp.concatenate(
            [act, jnp.zeros((cin_p - cin, lanes), act.dtype)], axis=0)

    # im2col over the flattened spatial axis: tap (dy,dx) is a lane rotation by
    # s = (dy-1)*W + (dx-1).  The masks zero every position whose tap falls into
    # the conv's implicit zero padding -- this also covers every rotation
    # wrap-around, including across the lane-concatenated image boundaries.
    cols = []
    for dy in range(3):
        for dx in range(3):
            t = dy * 3 + dx
            s = (dy - 1) * img_w + (dx - 1)
            if s == 0:
                tap = act                                         # centre tap
            else:
                tap = pltpu.roll(act, (-s) % lanes, axis=1) * masks[t:t + 1, :]
            cols.append(tap.astype(jnp.bfloat16))
    col = jnp.concatenate(cols, axis=0)          # (9*Cin_p, lanes) bf16, aligned

    # Single MXU matmul: bf16 x bf16 -> f32 accumulation, lane-dense result.
    conv = jnp.dot(w_ref[...], col, preferred_element_type=jnp.float32)

    # Fused dense connection (torch.cat): passthrough x, then the new features.
    for b in range(b_imgs):
        out_ref[b, :cin, :] = x_ref[b]
        out_ref[b, cin:, :] = conv[:, b * hw:(b + 1) * hw].astype(out_ref.dtype)


def dense_layer_forward(x_nchw, conv_w_oihw, gamma, beta, eps=1e-5):
    """x_nchw: (N, Cin, H, W). conv_w_oihw: (Cout, Cin, 3, 3). Returns NCHW
    (N, Cin+Cout, H, W) = cat([x, conv3x3(relu(bn(x)))], channel axis)."""
    N, Cin, H, W = x_nchw.shape
    Cout = conv_w_oihw.shape[0]
    Ctot = Cin + Cout
    HW = H * W

    x = x_nchw.astype(jnp.float32)

    # Training-mode BatchNorm2d statistics, ONE pass over x:
    #   var = E[x^2] - E[x]^2   (biased, clamped at 0 for fp safety).
    mean = jnp.mean(x, axis=(0, 2, 3))
    mean_sq = jnp.mean(x * x, axis=(0, 2, 3))
    var = jnp.maximum(mean_sq - mean * mean, 0.0)
    inv_std = lax.rsqrt(var + eps)
    scale = (gamma * inv_std).reshape(Cin, 1).astype(jnp.float32)
    shift = (beta - mean * gamma * inv_std).reshape(Cin, 1).astype(jnp.float32)

    # Free reshape: channels-first, spatial flattened (lane-dense last dim).
    x_flat = x.reshape(N, Cin, HW)

    # Channel rows padded to a bf16-tile multiple for the im2col buffer; padded
    # weight columns are zero so they contribute nothing.
    Cin_p = _round_up(Cin, 16)
    w_t = jnp.transpose(conv_w_oihw.astype(jnp.float32), (0, 2, 3, 1))  # (O,3,3,I)
    w_t = jnp.pad(w_t, ((0, 0), (0, 0), (0, 0), (0, Cin_p - Cin)))
    wf = w_t.reshape(Cout, 9 * Cin_p).astype(jnp.bfloat16)

    # Images per grid step (batched wide matmul).
    B = _pick_batch_block(N, Cin_p, Cout, HW)
    lanes = B * HW

    # Per-tap validity masks (1 inside the image, 0 in the conv zero padding),
    # tiled per image along the lane axis.
    yy = jnp.arange(H).reshape(H, 1)
    xx = jnp.arange(W).reshape(1, W)
    mask_list = []
    for dy in range(3):
        for dx in range(3):
            valid = ((yy + dy - 1 >= 0) & (yy + dy - 1 < H) &
                     (xx + dx - 1 >= 0) & (xx + dx - 1 < W))
            mask_list.append(valid.reshape(HW))
    masks = jnp.stack(mask_list, axis=0).astype(jnp.float32)      # (9, HW)
    masks_wide = jnp.tile(masks, (1, B))                          # (9, B*HW)

    out_flat = pl.pallas_call(
        functools.partial(dense_layer_kernel, img_w=W),
        out_shape=jax.ShapeDtypeStruct((N, Ctot, HW), jnp.float32),
        grid=(N // B,),
        in_specs=[
            pl.BlockSpec((B, Cin, HW), lambda n: (n, 0, 0)),
            pl.BlockSpec((Cin, 1), lambda n: (0, 0)),
            pl.BlockSpec((Cin, 1), lambda n: (0, 0)),
            pl.BlockSpec((9, lanes), lambda n: (0, 0)),
            pl.BlockSpec((Cout, 9 * Cin_p), lambda n: (0, 0)),
        ],
        out_specs=pl.BlockSpec((B, Ctot, HW), lambda n: (n, 0, 0)),
        compiler_params=pltpu.CompilerParams(
            dimension_semantics=("parallel",),
            vmem_limit_bytes=_pick_vmem_limit()),
    )(x_flat, scale, shift, masks_wide, wf)

    # Free reshape back to NCHW (no transpose, no concat needed).
    return out_flat.reshape(N, Ctot, H, W)


def _reference_forward(x_nchw, conv_w_oihw, gamma, beta, eps=1e-5):
    """Pure-JAX f32 reference (lax.conv, NCHW) for correctness checking."""
    x = x_nchw.astype(jnp.float32)
    mean = jnp.mean(x, axis=(0, 2, 3), keepdims=True)
    var = jnp.mean((x - mean) ** 2, axis=(0, 2, 3), keepdims=True)
    g = gamma.reshape(1, -1, 1, 1)
    b = beta.reshape(1, -1, 1, 1)
    act = jnp.maximum((x - mean) / jnp.sqrt(var + eps) * g + b, 0.0)
    out = lax.conv_general_dilated(
        act, conv_w_oihw.astype(jnp.float32), window_strides=(1, 1),
        padding=((1, 1), (1, 1)),
        dimension_numbers=("NCHW", "OIHW", "NCHW"))
    return jnp.concatenate([x, out], axis=1)


if __name__ == "__main__":
    N, Cin, H, W = 2, 4, 16, 16
    growth_rate = 8

    key = jax.random.PRNGKey(0)
    kx, kw = jax.random.split(key)
    x = jax.random.normal(kx, (N, Cin, H, W), dtype=jnp.float32)

    # Deterministic parameter init (shapes per nn.Conv2d / nn.BatchNorm2d).
    fan_in = Cin * 3 * 3
    conv_w = jax.random.normal(kw, (growth_rate, Cin, 3, 3),
                               dtype=jnp.float32) * (2.0 / fan_in) ** 0.5
    gamma = jnp.ones((Cin,), jnp.float32)
    beta = jnp.zeros((Cin,), jnp.float32)

    out = jax.block_until_ready(dense_layer_forward(x, conv_w, gamma, beta))
    ref = jax.block_until_ready(_reference_forward(x, conv_w, gamma, beta))

    assert out.shape == (N, Cin + growth_rate, H, W), out.shape
    # Passthrough channels must match exactly; conv channels use bf16 MXU
    # operands (f32 accumulation), so compare with a loosened tolerance.
    pass_err = float(jnp.max(jnp.abs(out[:, :Cin] - x)))
    conv_err = float(jnp.max(jnp.abs(out[:, Cin:] - ref[:, Cin:])))
    assert pass_err < 1e-6, pass_err
    assert conv_err < 5e-2, conv_err

    print("KERNEL_OK")
</pallas_src>

<mosaic_0001>
module attributes {stable_mosaic.version = 11 : i64} {
  func.func @dense_layer_kernel(%arg0: i32, %arg1: memref<2x4x256xf32, #tpu.memory_space<vmem>>, %arg2: memref<4x1xf32, #tpu.memory_space<vmem>>, %arg3: memref<4x1xf32, #tpu.memory_space<vmem>>, %arg4: memref<9x512xf32, #tpu.memory_space<vmem>>, %arg5: memref<8x144xbf16, #tpu.memory_space<vmem>>, %arg6: memref<2x12x256xf32, #tpu.memory_space<vmem>>) attributes {dimension_semantics = [#tpu.dimension_semantics<parallel>], iteration_bounds = array<i64: 1>, scalar_prefetch = 0 : i64, scratch_operands = 0 : i64, tpu.core_type = #tpu.core_type<tc>, window_params = [{transform_indices = @transform_0, window_bounds = array<i64: 2, 4, 256>}, {pipeline_mode = #tpu.pipeline_mode<synchronous>, transform_indices = @transform_1, window_bounds = array<i64: 4, 1>}, {pipeline_mode = #tpu.pipeline_mode<synchronous>, transform_indices = @transform_2, window_bounds = array<i64: 4, 1>}, {pipeline_mode = #tpu.pipeline_mode<synchronous>, transform_indices = @transform_3, window_bounds = array<i64: 9, 512>}, {pipeline_mode = #tpu.pipeline_mode<synchronous>, transform_indices = @transform_4, window_bounds = array<i64: 8, 144>}, {transform_indices = @transform_5, window_bounds = array<i64: 2, 12, 256>}]} {
    %c0 = arith.constant 0 : index
    %c0_0 = arith.constant 0 : index
    %0 = vector.load %arg2[%c0, %c0_0] : memref<4x1xf32, #tpu.memory_space<vmem>>, vector<4x1xf32>
    %c0_1 = arith.constant 0 : index
    %c0_2 = arith.constant 0 : index
    %1 = vector.load %arg3[%c0_1, %c0_2] : memref<4x1xf32, #tpu.memory_space<vmem>>, vector<4x1xf32>
    %c0_3 = arith.constant 0 : index
    %c0_4 = arith.constant 0 : index
    %2 = vector.load %arg4[%c0_3, %c0_4] : memref<9x512xf32, #tpu.memory_space<vmem>>, vector<9x512xf32>
    %c0_5 = arith.constant 0 : index
    %c0_6 = arith.constant 0 : index
    %c0_7 = arith.constant 0 : index
    %3 = vector.load %arg1[%c0_5, %c0_6, %c0_7] : memref<2x4x256xf32, #tpu.memory_space<vmem>>, vector<1x4x256xf32>
    %4 = vector.shape_cast %3 : vector<1x4x256xf32> to vector<4x256xf32>
    %c1 = arith.constant 1 : index
    %c0_8 = arith.constant 0 : index
    %c0_9 = arith.constant 0 : index
    %5 = vector.load %arg1[%c1, %c0_8, %c0_9] : memref<2x4x256xf32, #tpu.memory_space<vmem>>, vector<1x4x256xf32>
    %6 = vector.shape_cast %5 : vector<1x4x256xf32> to vector<4x256xf32>
    %7 = tpu.concatenate %4, %6 in 1 : vector<4x256xf32>, vector<4x256xf32> -> vector<4x512xf32>
    %8 = vector.broadcast %0 : vector<4x1xf32> to vector<4x512xf32>
    %9 = arith.mulf %7, %8 : vector<4x512xf32>
    %10 = vector.broadcast %1 : vector<4x1xf32> to vector<4x512xf32>
    %11 = arith.addf %9, %10 : vector<4x512xf32>
    %cst = arith.constant 0.000000e+00 : f32
    %12 = vector.broadcast %cst : f32 to vector<4x512xf32>
    %13 = arith.maximumf %11, %12 : vector<4x512xf32>
    %cst_10 = arith.constant 0.000000e+00 : f32
    %14 = vector.broadcast %cst_10 : f32 to vector<12x512xf32>
    %15 = tpu.concatenate %13, %14 in 0 : vector<4x512xf32>, vector<12x512xf32> -> vector<16x512xf32>
    %c17_i32 = arith.constant 17 : i32
    %16 = tpu.dynamic_rotate %15 by %c17_i32 dim 1 : vector<16x512xf32>, i32 -> vector<16x512xf32>
    %17 = vector.extract_strided_slice %2 {offsets = [0, 0], sizes = [1, 512], strides = [1, 1]} : vector<9x512xf32> to vector<1x512xf32>
    %18 = vector.broadcast %17 : vector<1x512xf32> to vector<16x512xf32>
    %19 = arith.mulf %16, %18 : vector<16x512xf32>
    %20 = arith.truncf %19 : vector<16x512xf32> to vector<16x512xbf16>
    %c16_i32 = arith.constant 16 : i32
    %21 = tpu.dynamic_rotate %15 by %c16_i32 dim 1 : vector<16x512xf32>, i32 -> vector<16x512xf32>
    %22 = vector.extract_strided_slice %2 {offsets = [1, 0], sizes = [1, 512], strides = [1, 1]} : vector<9x512xf32> to vector<1x512xf32>
    %23 = vector.broadcast %22 : vector<1x512xf32> to vector<16x512xf32>
    %24 = arith.mulf %21, %23 : vector<16x512xf32>
    %25 = arith.truncf %24 : vector<16x512xf32> to vector<16x512xbf16>
    %c15_i32 = arith.constant 15 : i32
    %26 = tpu.dynamic_rotate %15 by %c15_i32 dim 1 : vector<16x512xf32>, i32 -> vector<16x512xf32>
    %27 = vector.extract_strided_slice %2 {offsets = [2, 0], sizes = [1, 512], strides = [1, 1]} : vector<9x512xf32> to vector<1x512xf32>
    %28 = vector.broadcast %27 : vector<1x512xf32> to vector<16x512xf32>
    %29 = arith.mulf %26, %28 : vector<16x512xf32>
    %30 = arith.truncf %29 : vector<16x512xf32> to vector<16x512xbf16>
    %c1_i32 = arith.constant 1 : i32
    %31 = tpu.dynamic_rotate %15 by %c1_i32 dim 1 : vector<16x512xf32>, i32 -> vector<16x512xf32>
    %32 = vector.extract_strided_slice %2 {offsets = [3, 0], sizes = [1, 512], strides = [1, 1]} : vector<9x512xf32> to vector<1x512xf32>
    %33 = vector.broadcast %32 : vector<1x512xf32> to vector<16x512xf32>
    %34 = arith.mulf %31, %33 : vector<16x512xf32>
    %35 = arith.truncf %34 : vector<16x512xf32> to vector<16x512xbf16>
    %36 = arith.truncf %15 : vector<16x512xf32> to vector<16x512xbf16>
    %c511_i32 = arith.constant 511 : i32
    %37 = tpu.dynamic_rotate %15 by %c511_i32 dim 1 : vector<16x512xf32>, i32 -> vector<16x512xf32>
    %38 = vector.extract_strided_slice %2 {offsets = [5, 0], sizes = [1, 512], strides = [1, 1]} : vector<9x512xf32> to vector<1x512xf32>
    %39 = vector.broadcast %38 : vector<1x512xf32> to vector<16x512xf32>
    %40 = arith.mulf %37, %39 : vector<16x512xf32>
    %41 = arith.truncf %40 : vector<16x512xf32> to vector<16x512xbf16>
    %c497_i32 = arith.constant 497 : i32
    %42 = tpu.dynamic_rotate %15 by %c497_i32 dim 1 : vector<16x512xf32>, i32 -> vector<16x512xf32>
    %43 = vector.extract_strided_slice %2 {offsets = [6, 0], sizes = [1, 512], strides = [1, 1]} : vector<9x512xf32> to vector<1x512xf32>
    %44 = vector.broadcast %43 : vector<1x512xf32> to vector<16x512xf32>
    %45 = arith.mulf %42, %44 : vector<16x512xf32>
    %46 = arith.truncf %45 : vector<16x512xf32> to vector<16x512xbf16>
    %c496_i32 = arith.constant 496 : i32
    %47 = tpu.dynamic_rotate %15 by %c496_i32 dim 1 : vector<16x512xf32>, i32 -> vector<16x512xf32>
    %48 = vector.extract_strided_slice %2 {offsets = [7, 0], sizes = [1, 512], strides = [1, 1]} : vector<9x512xf32> to vector<1x512xf32>
    %49 = vector.broadcast %48 : vector<1x512xf32> to vector<16x512xf32>
    %50 = arith.mulf %47, %49 : vector<16x512xf32>
    %51 = arith.truncf %50 : vector<16x512xf32> to vector<16x512xbf16>
    %c495_i32 = arith.constant 495 : i32
    %52 = tpu.dynamic_rotate %15 by %c495_i32 dim 1 : vector<16x512xf32>, i32 -> vector<16x512xf32>
    %53 = vector.extract_strided_slice %2 {offsets = [8, 0], sizes = [1, 512], strides = [1, 1]} : vector<9x512xf32> to vector<1x512xf32>
    %54 = vector.broadcast %53 : vector<1x512xf32> to vector<16x512xf32>
    %55 = arith.mulf %52, %54 : vector<16x512xf32>
    %56 = arith.truncf %55 : vector<16x512xf32> to vector<16x512xbf16>
    %57 = tpu.concatenate %20, %25, %30, %35, %36, %41, %46, %51, %56 in 0 : vector<16x512xbf16>, vector<16x512xbf16>, vector<16x512xbf16>, vector<16x512xbf16>, vector<16x512xbf16>, vector<16x512xbf16>, vector<16x512xbf16>, vector<16x512xbf16>, vector<16x512xbf16> -> vector<144x512xbf16>
    %c0_11 = arith.constant 0 : index
    %c0_12 = arith.constant 0 : index
    %58 = vector.load %arg5[%c0_11, %c0_12] : memref<8x144xbf16, #tpu.memory_space<vmem>>, vector<8x144xbf16>
    %cst_13 = arith.constant dense<0.000000e+00> : vector<8x512xf32>
    %59 = tpu.matmul %58, %57, %cst_13 {dimension_numbers = #tpu.dot_dimension_numbers<[1], [0], [0], [1], [0, 0, 1, 1], [], []>} : vector<8x144xbf16>, vector<144x512xbf16>, vector<8x512xf32> -> vector<8x512xf32>
    %c0_14 = arith.constant 0 : index
    %c0_15 = arith.constant 0 : index
    %c0_16 = arith.constant 0 : index
    %60 = vector.load %arg1[%c0_14, %c0_15, %c0_16] : memref<2x4x256xf32, #tpu.memory_space<vmem>>, vector<1x4x256xf32>
    %61 = vector.shape_cast %60 : vector<1x4x256xf32> to vector<4x256xf32>
    %c0_17 = arith.constant 0 : index
    %c0_18 = arith.constant 0 : index
    %c0_19 = arith.constant 0 : index
    %62 = vector.load %arg6[%c0_17, %c0_18, %c0_19] : memref<2x12x256xf32, #tpu.memory_space<vmem>>, vector<1x4x256xf32>
    %63 = vector.shape_cast %62 : vector<1x4x256xf32> to vector<4x256xf32>
    %64 = vector.shape_cast %61 : vector<4x256xf32> to vector<1x4x256xf32>
    tpu.vector_store %arg6[%c0_17, %c0_18, %c0_19], %64 {strides = array<i32>} : memref<2x12x256xf32, #tpu.memory_space<vmem>>, vector<1x4x256xf32>,
    %65 = vector.extract_strided_slice %59 {offsets = [0, 0], sizes = [8, 256], strides = [1, 1]} : vector<8x512xf32> to vector<8x256xf32>
    %c0_20 = arith.constant 0 : index
    %c4 = arith.constant 4 : index
    %c0_21 = arith.constant 0 : index
    %66 = vector.load %arg6[%c0_20, %c4, %c0_21] : memref<2x12x256xf32, #tpu.memory_space<vmem>>, vector<1x8x256xf32>
    %67 = vector.shape_cast %66 : vector<1x8x256xf32> to vector<8x256xf32>
    %68 = vector.shape_cast %65 : vector<8x256xf32> to vector<1x8x256xf32>
    tpu.vector_store %arg6[%c0_20, %c4, %c0_21], %68 {strides = array<i32>} : memref<2x12x256xf32, #tpu.memory_space<vmem>>, vector<1x8x256xf32>,
    %c1_22 = arith.constant 1 : index
    %c0_23 = arith.constant 0 : index
    %c0_24 = arith.constant 0 : index
    %69 = vector.load %arg1[%c1_22, %c0_23, %c0_24] : memref<2x4x256xf32, #tpu.memory_space<vmem>>, vector<1x4x256xf32>
    %70 = vector.shape_cast %69 : vector<1x4x256xf32> to vector<4x256xf32>
    %c1_25 = arith.constant 1 : index
    %c0_26 = arith.constant 0 : index
    %c0_27 = arith.constant 0 : index
    %71 = vector.load %arg6[%c1_25, %c0_26, %c0_27] : memref<2x12x256xf32, #tpu.memory_space<vmem>>, vector<1x4x256xf32>
    %72 = vector.shape_cast %71 : vector<1x4x256xf32> to vector<4x256xf32>
    %73 = vector.shape_cast %70 : vector<4x256xf32> to vector<1x4x256xf32>
    tpu.vector_store %arg6[%c1_25, %c0_26, %c0_27], %73 {strides = array<i32>} : memref<2x12x256xf32, #tpu.memory_space<vmem>>, vector<1x4x256xf32>,
    %74 = vector.extract_strided_slice %59 {offsets = [0, 256], sizes = [8, 256], strides = [1, 1]} : vector<8x512xf32> to vector<8x256xf32>
    %c1_28 = arith.constant 1 : index
    %c4_29 = arith.constant 4 : index
    %c0_30 = arith.constant 0 : index
    %75 = vector.load %arg6[%c1_28, %c4_29, %c0_30] : memref<2x12x256xf32, #tpu.memory_space<vmem>>, vector<1x8x256xf32>
    %76 = vector.shape_cast %75 : vector<1x8x256xf32> to vector<8x256xf32>
    %77 = vector.shape_cast %74 : vector<8x256xf32> to vector<1x8x256xf32>
    tpu.vector_store %arg6[%c1_28, %c4_29, %c0_30], %77 {strides = array<i32>} : memref<2x12x256xf32, #tpu.memory_space<vmem>>, vector<1x8x256xf32>,
    return
  }
  func.func @transform_0(%arg0: i32) -> (i32, i32, i32) {
    %c0_i32 = arith.constant 0 : i32
    %c0_i32_0 = arith.constant 0 : i32
    %c0_i32_1 = arith.constant 0 : i32
    return %arg0, %c0_i32, %c0_i32_0 : i32, i32, i32
  }
  func.func @transform_1(%arg0: i32) -> (i32, i32) {
    %c0_i32 = arith.constant 0 : i32
    %c0_i32_0 = arith.constant 0 : i32
    %c0_i32_1 = arith.constant 0 : i32
    return %c0_i32, %c0_i32_0 : i32, i32
  }
  func.func @transform_2(%arg0: i32) -> (i32, i32) {
    %c0_i32 = arith.constant 0 : i32
    %c0_i32_0 = arith.constant 0 : i32
    %c0_i32_1 = arith.constant 0 : i32
    return %c0_i32, %c0_i32_0 : i32, i32
  }
  func.func @transform_3(%arg0: i32) -> (i32, i32) {
    %c0_i32 = arith.constant 0 : i32
    %c0_i32_0 = arith.constant 0 : i32
    %c0_i32_1 = arith.constant 0 : i32
    return %c0_i32, %c0_i32_0 : i32, i32
  }
  func.func @transform_4(%arg0: i32) -> (i32, i32) {
    %c0_i32 = arith.constant 0 : i32
    %c0_i32_0 = arith.constant 0 : i32
    %c0_i32_1 = arith.constant 0 : i32
    return %c0_i32, %c0_i32_0 : i32, i32
  }
  func.func @transform_5(%arg0: i32) -> (i32, i32, i32) {
    %c0_i32 = arith.constant 0 : i32
    %c0_i32_0 = arith.constant 0 : i32
    %c0_i32_1 = arith.constant 0 : i32
    return %arg0, %c0_i32, %c0_i32_0 : i32, i32, i32
  }
}

</mosaic_0001>

<bundles_post_ra>
// kernel: tpu_custom_call.1
= control target key start
LH: loop header
LB: loop body
LE: loop exit
PB: predicated region body
PF: predicated region fallthrough
CT: control target
= control target key end

     0   :  { %10 = vsyncpa [#allocation3], 0  ;;  %s1018_s0 = inlined_call_operand.hbm [shape: f32[2,4,256], index: 0, kind: input, shape index: {}]   ;;  %s1019_s1 = inlined_call_operand.vmem [shape: f32[4,1], index: 1, kind: input, shape index: {}]   ;;  %s1020_s2 = inlined_call_operand.vmem [shape: f32[4,1], index: 2, kind: input, shape index: {}]   ;;  %s1021_s3 = inlined_call_operand.hbm [shape: f32[9,512], index: 3, kind: input, shape index: {}]   ;;  %s1022_s4 = inlined_call_operand.vmem [shape: bf16[8,144], index: 4, kind: input, shape index: {}]   ;;  %s1023_s5 = inlined_call_operand.vmem [shape: f32[2,12,256], index: 5, kind: output, shape index: {}]  }
   0x1   :  { %11 = vsyncpa [#allocation5], 0  ;;  %s669_s18 = smov [#allocation2]   ;;  %s621_s22 = scalar_lea.hbm %s1018_s0, 256 }
   0x2   :  { %s17_s19 = sshll.u32 %s669_s18, 4  ;;  %p622_p0 = scmp.ne.s32.totalorder %s1018_s0, %s621_s22  ;;  %s18_s19 = int_to_ptr.vmem [resolvable:$true] %s17_s19 }
   0x3   :  { %p625_p1 = scmp.lt.u32.totalorder %s621_s22, %s1018_s0 }
   0x5   :  { %p627_p2 = pnand %p625_p1, %p622_p0 }
   0x7   :  { %630 = shalt.err (!%p627_p2)
}
   0x8   :  { %s631_s27 = scalar_lea.vmem %s18_s19, 256  ;;  %p636_p4 = scmp.lt.s32.totalorder %s18_s19, %s18_s19 }
   0x9   :  { %p632_p3 = scmp.ne.s32.totalorder %s18_s19, %s631_s27  ;;  %p637_p5 = scmp.lt.s32.totalorder %s631_s27, %s631_s27 }
   0xb   :  { %p638_p6 = por %p637_p5, %p636_p4 }
   0xd   :  { %p639_p7 = pnand %p638_p6, %p632_p3 }
   0xf   :  { %642 = shalt.err (!%p639_p7)
}
  0x10   :  { %s670_s28 = smov 128   ;;  %s671_s29 = smov 8  }
  0x11   :  { %23 = dma.hbm_to_vmem [thread:$0]  %s1018_s0, 256, %s18_s19, [#allocation3], %s670_s28, %s670_s28, %s671_s29  }
  0x12   :  { %s672_s7 = smov [#allocation4]   ;;  %s643_s11 = scalar_lea.hbm %s1021_s3, 1024 }
  0x13   :  { %s33_s8 = sshll.u32 %s672_s7, 4  ;;  %p644_p8 = scmp.ne.s32.totalorder %s1021_s3, %s643_s11  ;;  %s34_s8 = int_to_ptr.vmem [resolvable:$true] %s33_s8 }
  0x14   :  { %p647_p9 = scmp.lt.u32.totalorder %s643_s11, %s1021_s3 }
  0x16   :  { %p649_p10 = pnand %p647_p9, %p644_p8 }
  0x18   :  { %652 = shalt.err (!%p649_p10)
}
  0x19   :  { %s653_s16 = scalar_lea.vmem %s34_s8, 1024  ;;  %p658_p12 = scmp.lt.s32.totalorder %s34_s8, %s34_s8 }
  0x1a   :  { %p654_p11 = scmp.ne.s32.totalorder %s34_s8, %s653_s16  ;;  %p659_p13 = scmp.lt.s32.totalorder %s653_s16, %s653_s16 }
  0x1c   :  { %p660_p0 = por %p659_p13, %p658_p12 }
  0x1e   :  { %p661_p1 = pnand %p660_p0, %p654_p11 }
  0x20   :  { %664 = shalt.err (!%p661_p1)
}
  0x21   :  { %s673_s0 = smov 512   ;;  %s674_s17 = smov 32  }
  0x22   :  { %39 = dma.hbm_to_vmem [thread:$0]  %s1021_s3, 1024, %s34_s8, [#allocation5], %s673_s0, %s673_s0, %s674_s17  }
  0x23   :  { %665 = dma.done.wait [#allocation3], 256  }
  0x24   :  { %666 = vsyncadd [#allocation3], 4294967040 }
  0x25   :  { %667 = dma.done.wait [#allocation5], 1024  }
  0x26   :  { %668 = vsyncadd [#allocation5], 4294966272  ;;  %v675_v0 = vmov 0   ;;  %v676_v1 = vmov 0.0   ;;  %s677_s20 = smov 16   ;;  %v550_v2 = vld [vmem:[#allocation2 + $0x8] sm:$0xff]  ;;  %v105_v33 = vlaneseq }
  0x27   :  { %616 = vset.pattern.permute.xlu0 %v675_v0  ;;  %142 = vrot.lane.b32.xlu1 %v676_v1, %s677_s20  ;;  %v49_v3 = vld [vmem:[%s1019_s1] sm:$0xf]  ;;  %v552_v4 = vcombine.high %v550_v2, %v550_v2  ;;  %593 = vst [vmem:[%s1023_s5 + $0x20] sm:$0xf] %v550_v2  ;;  %s678_s28 = smov 1   ;;  %s679_s7 = smov 113  }
  0x28   :  { %70 = vperm.xlu0 %616, %v49_v3   ;;  %v59_v5 = vld [vmem:[#allocation2] sm:$0xff]  ;;  %s681_s8 = smov 15   ;;  %s682_s9 = smov 127   ;;  %vm90_vm0 = vcmask 1043456   ;;  %vm452_vm1 = vcmask 130048   ;;  %v844_v36 = vshrl.u32 %v105_v33, 7 }
  0x29   :  { %v50_v6 = vld [vmem:[%s1020_s2] sm:$0xf]  ;;  %v63_v7 = vcombine.high %v59_v5, %v59_v5  ;;  %538 = vst [vmem:[%s1023_s5] sm:$0xf] %v59_v5  ;;  %594 = vst [vmem:[%s1023_s5 + $0x28] sm:$0xf] %v552_v4  ;;  %s680_s2 = smov 17  }
  0x2a   :  { %s683_s10 = smov 112   ;;  %s684_s11 = smov 111   ;;  %v827_v26 = vld [vmem:[%s1022_s4] sm:$0xff]  ;;  %v846_v37 = vand.u32 127, %v105_v33  ;;  %v114_v38 = vsub.s32 0, %v844_v36  ;;  %v849_v41 = vld [vmem:[#allocation4 + $0x8] sm:$0xff] }
  0x2b   :  { %228 = vrot.lane.b32.xlu1 %v676_v1, %s678_s28  ;;  %539 = vst [vmem:[%s1023_s5 + $0x8] sm:$0xf] %v63_v7  ;;  %v578_v27 = vcombine.high %v827_v26, %v827_v26  ;;  %v853_v45 = vld [vmem:[#allocation4] sm:$0xff]  ;;  %v157_v46 = vsub.s32 1, %v844_v36  ;;  %v859_v49 = vld [vmem:[#allocation4 + $0x18] sm:$0xff]  ;;  %v861_v50 = vld [vmem:[#allocation4 + $0x10] sm:$0xff] }
  0x2c   :  { %79 = vperm.xlu0 %616, %v50_v6   ;;  %vm107_vm2 = vcmp.lt.s32.totalorder %v846_v37, 17  ;;  %v119_v42 = vrot.slane %v849_v41, %v114_v38  ;;  %v115_v48 = vrot.slane %v853_v45, %v114_v38  ;;  %v127_v54 = vrot.slane %v859_v49, %v114_v38 }
  0x2d   :  { %585 = vmatprep.mubr.msk.bf16.mxu0 %vm452_vm1, %v578_v27  ;;  %592 = vmatprep.mubr.msk.bf16.mxu1 %vm452_vm1, %v578_v27  ;;  %v123_v55 = vrot.slane %v861_v50, %v114_v38  ;;  %v158_v59 = vrot.slane %v853_v45, %v157_v46  ;;  %v162_v60 = vrot.slane %v849_v41, %v157_v46  ;;  %vm150_vm3 = vcmp.lt.s32.totalorder %v846_v37, 16 }
  0x2e   :  { %vm193_vm4 = vcmp.lt.s32.totalorder %v846_v37, 15  ;;  %vm236_vm5 = vcmp.lt.s32.totalorder %v846_v37, 1  ;;  %vm685_vm6 = vmmov 1   ;;  %vm283_vm8 = vcmp.lt.s32.totalorder %v846_v37, 127 }
  0x2f   :  { %318 = vrot.lane.b32.xlu1 %v676_v1, %s679_s7  ;;  %vm928_vm7 = vmpackc.low %vm685_vm6, %vm90_vm0  ;;  %vm326_vm9 = vcmp.lt.s32.totalorder %v846_v37, 113  ;;  %vm369_vm10 = vcmp.lt.s32.totalorder %v846_v37, 112  ;;  %vm412_vm11 = vcmp.lt.s32.totalorder %v846_v37, 111 }
  0x30   :  { %97 = vrot.lane.b32.xlu0 %v676_v1, %s680_s2 }
  0x34   :  { %185 = vrot.lane.b32.xlu0 %v676_v1, %s681_s8 }
  0x38   :  { %275 = vrot.lane.b32.xlu0 %v676_v1, %s682_s9 }
  0x3c   :  { %361 = vrot.lane.b32.xlu0 %v676_v1, %s683_s10 }
  0x99   :  { %v832_v29 = vpop.permute.xlu1 %142 }
  0x9a   :  { %v175_v27 = vmul.f32 %v158_v59, %v832_v29 }
  0x9d   :  { %v836_v31 = vpop.permute.xlu1 %228 }
  0xa1   :  { %v840_v34 = vpop.permute.xlu1 %318 }
  0xa7   :  { %v71_v8 = vpop.permute.xlu0 %70 }
  0xa8   :  { %v73_v9 = vmul.f32 %v71_v8, %v59_v5  ;;  %v74_v10 = vmul.f32 %v71_v8, %v63_v7  ;;  %v75_v11 = vmul.f32 %v550_v2, %v71_v8  ;;  %v76_v16 = vmul.f32 %v552_v4, %v71_v8 }
  0xab   :  { %v80_v12 = vpop.permute.xlu0 %79 }
  0xac   :  { %v772_v13 = vadd.f32 %v80_v12, %v73_v9  ;;  %v774_v14 = vadd.f32 %v80_v12, %v74_v10  ;;  %v776_v15 = vadd.f32 %v80_v12, %v75_v11  ;;  %v780_v19 = vadd.f32 %v80_v12, %v76_v16 }
  0xad   :  { %v166_v10 = vrot.slane %v861_v50, %v157_v46  ;;  %v170_v11 = vrot.slane %v859_v49, %v157_v46 }
  0xae   :  { %v86_v17 = vmax.f32 %v772_v13, 0.0  ;;  %v88_v18 = vmax.f32 %v776_v15, 0.0  ;;  %v87_v20 = vmax.f32 %v774_v14, 0.0  ;;  %v89_v23 = vmax.f32 %v780_v19, 0.0 }
  0xaf   :  { %v98_v28 = vpop.permute.xlu0 %97  ;;  %v178_v46 = vmul.f32 %v170_v11, %v832_v29 }
  0xb0   :  { %v91_v21 = vsel %vm90_vm0, %v86_v17, 0.0  ;;  %v93_v22 = vsel %vm90_vm0, %v88_v18, 0.0  ;;  %v92_v24 = vsel %vm90_vm0, %v87_v20, 0.0  ;;  %v94_v25 = vsel %vm90_vm0, %v89_v23, 0.0 }
  0xb1   :  { %101 = vrot.lane.b32.xlu0 %v93_v22, %s680_s2  ;;  %95 = vrot.lane.b32.xlu1 %v91_v21, %s680_s2  ;;  %v133_v53 = vmul.f32 %v119_v42, %v98_v28  ;;  %v132_v2 = vmul.f32 %v115_v48, %v98_v28  ;;  %v135_v4 = vmul.f32 %v127_v54, %v98_v28 }
  0xb2   :  { %v134_v5 = vmul.f32 %v123_v55, %v98_v28  ;;  %v200_v28 = vsub.s32 2, %v844_v36 }
  0xb3   :  { %v834_v30 = vpop.permute.xlu0 %185 }
  0xb5   :  { %144 = vrot.lane.b32.xlu0 %v92_v24, %s677_s20  ;;  %99 = vrot.lane.b32.xlu1 %v92_v24, %s680_s2 }
  0xb7   :  { %v838_v32 = vpop.permute.xlu0 %275 }
  0xb9   :  { %148 = vrot.lane.b32.xlu0 %v94_v25, %s677_s20  ;;  %103 = vrot.lane.b32.xlu1 %v94_v25, %s680_s2 }
  0xbb   :  { %v842_v35 = vpop.permute.xlu0 %361 }
  0xbd   :  { %183 = vrot.lane.b32.xlu0 %v91_v21, %s681_s8  ;;  %140 = vrot.lane.b32.xlu1 %v91_v21, %s677_s20 }
  0xc1   :  { %189 = vrot.lane.b32.xlu0 %v93_v22, %s681_s8  ;;  %146 = vrot.lane.b32.xlu1 %v93_v22, %s677_s20 }
  0xc5   :  { %230 = vrot.lane.b32.xlu0 %v92_v24, %s678_s28  ;;  %187 = vrot.lane.b32.xlu1 %v92_v24, %s681_s8 }
  0xc9   :  { %234 = vrot.lane.b32.xlu0 %v94_v25, %s678_s28  ;;  %191 = vrot.lane.b32.xlu1 %v94_v25, %s681_s8 }
  0xcd   :  { %273 = vrot.lane.b32.xlu0 %v91_v21, %s682_s9  ;;  %226 = vrot.lane.b32.xlu1 %v91_v21, %s678_s28 }
  0xd1   :  { %279 = vrot.lane.b32.xlu0 %v93_v22, %s682_s9  ;;  %232 = vrot.lane.b32.xlu1 %v93_v22, %s678_s28 }
  0xd5   :  { %320 = vrot.lane.b32.xlu0 %v92_v24, %s679_s7  ;;  %277 = vrot.lane.b32.xlu1 %v92_v24, %s682_s9 }
  0xd9   :  { %324 = vrot.lane.b32.xlu0 %v94_v25, %s679_s7  ;;  %281 = vrot.lane.b32.xlu1 %v94_v25, %s682_s9 }
  0xdd   :  { %359 = vrot.lane.b32.xlu0 %v91_v21, %s683_s10  ;;  %316 = vrot.lane.b32.xlu1 %v91_v21, %s679_s7 }
  0xe1   :  { %365 = vrot.lane.b32.xlu0 %v93_v22, %s683_s10  ;;  %322 = vrot.lane.b32.xlu1 %v93_v22, %s679_s7 }
  0xe5   :  { %406 = vrot.lane.b32.xlu0 %v92_v24, %s684_s11  ;;  %363 = vrot.lane.b32.xlu1 %v92_v24, %s683_s10 }
  0xe9   :  { %410 = vrot.lane.b32.xlu0 %v94_v25, %s684_s11  ;;  %367 = vrot.lane.b32.xlu1 %v94_v25, %s683_s10 }
  0xed   :  { %402 = vrot.lane.b32.xlu1 %v91_v21, %s684_s11 }
  0xf1   :  { %408 = vrot.lane.b32.xlu1 %v93_v22, %s684_s11  ;;  %v176_v22 = vmul.f32 %v162_v60, %v832_v29 }
  0xf5   :  { %404 = vrot.lane.b32.xlu1 %v676_v1, %s684_s11 }
 0x123   :  { %v96_v39 = vpop.permute.xlu1 %95  ;;  %v102_v40 = vpop.permute.xlu0 %101 }
 0x127   :  { %v100_v43 = vpop.permute.xlu1 %99  ;;  %v145_v44 = vpop.permute.xlu0 %144 }
 0x128   :  { %v110_v47 = vsel %vm107_vm2, %v96_v39, %v100_v43  ;;  %v109_v51 = vsel %vm107_vm2, %v100_v43, %v102_v40 }
 0x129   :  { %v129_v52 = vmul.f32 %v119_v42, %v110_v47  ;;  %v130_v61 = vmul.f32 %v123_v55, %v109_v51  ;;  %v177_v47 = vmul.f32 %v166_v10, %v832_v29 }
 0x12b   :  { %v104_v56 = vpop.permute.xlu1 %103  ;;  %v149_v57 = vpop.permute.xlu0 %148  ;;  %v137_v58 = vpack.c.bf16 %v133_v53, %v129_v52  ;;  %v138_v21 = vpack.c.bf16 %v134_v5, %v130_v61  ;;  %v205_v52 = vrot.slane %v849_v41, %v200_v28 }
 0x12c   :  { %v108_v62 = vsel %vm107_vm2, %v102_v40, %v104_v56  ;;  %v111_v63 = vsel %vm107_vm2, %v104_v56, %v96_v39 }
 0x12d   :  { %v128_v0 = vmul.f32 %v115_v48, %v111_v63  ;;  %456 = vmatprep.subr.bf16.mxu0 %v137_v58  ;;  %v131_v3 = vmul.f32 %v127_v54, %v108_v62  ;;  %v201_v58 = vrot.slane %v853_v45, %v200_v28  ;;  %v219_v61 = vmul.f32 %v205_v52, %v834_v30 }
 0x12e   :  { %v209_v62 = vrot.slane %v861_v50, %v200_v28 }
 0x12f   :  { %v141_v6 = vpop.permute.xlu1 %140  ;;  %v184_v7 = vpop.permute.xlu0 %183  ;;  %v136_v8 = vpack.c.bf16 %v132_v2, %v128_v0  ;;  %v139_v9 = vpack.c.bf16 %v135_v4, %v131_v3 }
 0x130   :  { %v153_v12 = vsel %vm150_vm3, %v141_v6, %v145_v44  ;;  %v154_v16 = vsel %vm150_vm3, %v149_v57, %v141_v6 }
 0x131   :  { %v171_v24 = vmul.f32 %v158_v59, %v154_v16  ;;  %v172_v25 = vmul.f32 %v162_v60, %v153_v12  ;;  %457 = vmatpush1.bf16.msra.mxu0 %v136_v8  ;;  %497 = vmatprep.subr.bf16.mxu1 %v139_v9  ;;  %v213_v60 = vrot.slane %v859_v49, %v200_v28 }
 0x132   :  { %498 = vmatpush1.bf16.msra.mxu1 %v138_v21  ;;  %v218_v9 = vmul.f32 %v201_v58, %v834_v30  ;;  %v220_v16 = vmul.f32 %v209_v62, %v834_v30 }
 0x133   :  { %v147_v33 = vpop.permute.xlu1 %146  ;;  %v190_v38 = vpop.permute.xlu0 %189  ;;  %v180_v39 = vpack.c.bf16 %v176_v22, %v172_v25  ;;  %v179_v40 = vpack.c.bf16 %v175_v27, %v171_v24  ;;  %v221_v12 = vmul.f32 %v213_v60, %v834_v30 }
 0x134   :  { %v151_v42 = vsel %vm150_vm3, %v147_v33, %v149_v57  ;;  %v152_v43 = vsel %vm150_vm3, %v145_v44, %v147_v33  ;;  %v243_v57 = vsub.s32 3, %v844_v36 }
 0x135   :  { %v173_v48 = vmul.f32 %v166_v10, %v152_v43  ;;  %v174_v51 = vmul.f32 %v170_v11, %v151_v42  ;;  %458 = vmatprep.subr.bf16.mxu0 %v180_v39 }
 0x136   :  { %459 = vmatpush1.bf16.msra.mxu0 %v179_v40  ;;  %v244_v3 = vrot.slane %v853_v45, %v243_v57  ;;  %v248_v4 = vrot.slane %v849_v41, %v243_v57  ;;  %v252_v21 = vrot.slane %v861_v50, %v243_v57  ;;  %v256_v28 = vrot.slane %v859_v49, %v243_v57 }
 0x137   :  { %v188_v53 = vpop.permute.xlu1 %187  ;;  %v231_v54 = vpop.permute.xlu0 %230  ;;  %v182_v55 = vpack.c.bf16 %v178_v46, %v174_v51  ;;  %v181_v56 = vpack.c.bf16 %v177_v47, %v173_v48  ;;  %v290_v40 = vsub.s32 5, %v844_v36 }
 0x138   :  { %v196_v44 = vsel %vm193_vm4, %v184_v7, %v188_v53  ;;  %v195_v29 = vsel %vm193_vm4, %v188_v53, %v190_v38  ;;  %v261_v43 = vmul.f32 %v244_v3, %v836_v31  ;;  %v263_v53 = vmul.f32 %v252_v21, %v836_v31 }
 0x139   :  { %v215_v59 = vmul.f32 %v205_v52, %v196_v44  ;;  %499 = vmatprep.subr.bf16.mxu1 %v182_v55  ;;  %v216_v5 = vmul.f32 %v209_v62, %v195_v29  ;;  %v264_v52 = vmul.f32 %v256_v28, %v836_v31  ;;  %v291_v57 = vrot.slane %v853_v45, %v290_v40 }
 0x13a   :  { %500 = vmatpush1.bf16.msra.mxu1 %v181_v56  ;;  %v295_v44 = vrot.slane %v849_v41, %v290_v40 }
 0x13b   :  { %v192_v63 = vpop.permute.xlu1 %191  ;;  %v235_v0 = vpop.permute.xlu0 %234  ;;  %v223_v2 = vpack.c.bf16 %v219_v61, %v215_v59  ;;  %v224_v39 = vpack.c.bf16 %v220_v16, %v216_v5  ;;  %v590_v16 = vpack.c.bf16 %v676_v1, %v88_v18 }
 0x13c   :  { %v194_v6 = vsel %vm193_vm4, %v190_v38, %v192_v63  ;;  %v197_v8 = vsel %vm193_vm4, %v192_v63, %v184_v7  ;;  %v262_v7 = vmul.f32 %v248_v4, %v836_v31  ;;  %v580_v31 = vpack.c.bf16 %v676_v1, %v87_v20 }
 0x13d   :  { %v214_v10 = vmul.f32 %v201_v58, %v197_v8  ;;  %v217_v11 = vmul.f32 %v213_v60, %v194_v6  ;;  %460 = vmatprep.subr.bf16.mxu0 %v223_v2  ;;  %v303_v2 = vrot.slane %v859_v49, %v290_v40  ;;  %v583_v20 = vpack.c.bf16 %v676_v1, %v86_v17 }
 0x13e   :  { %v309_v8 = vmul.f32 %v295_v44, %v838_v32 }
 0x13f   :  { %v227_v22 = vpop.permute.xlu1 %226  ;;  %v274_v24 = vpop.permute.xlu0 %273  ;;  %v222_v25 = vpack.c.bf16 %v218_v9, %v214_v10  ;;  %v225_v27 = vpack.c.bf16 %v221_v12, %v217_v11  ;;  %v308_v9 = vmul.f32 %v291_v57, %v838_v32 }
 0x140   :  { %v239_v33 = vsel %vm236_vm5, %v227_v22, %v231_v54  ;;  %v240_v38 = vsel %vm236_vm5, %v235_v0, %v227_v22 }
 0x141   :  { %v257_v30 = vmul.f32 %v244_v3, %v240_v38  ;;  %v258_v42 = vmul.f32 %v248_v4, %v239_v33  ;;  %461 = vmatpush1.bf16.msra.mxu0 %v222_v25  ;;  %501 = vmatprep.subr.bf16.mxu1 %v225_v27  ;;  %v587_v4 = vpack.c.bf16 %v676_v1, %v89_v23  ;;  %v376_v33 = vsub.s32 7, %v844_v36 }
 0x142   :  { %502 = vmatpush1.bf16.msra.mxu1 %v224_v39 }
 0x143   :  { %v233_v46 = vpop.permute.xlu1 %232  ;;  %v280_v47 = vpop.permute.xlu0 %279  ;;  %v266_v48 = vpack.c.bf16 %v262_v7, %v258_v42  ;;  %v265_v51 = vpack.c.bf16 %v261_v43, %v257_v30 }
 0x144   :  { %v237_v55 = vsel %vm236_vm5, %v233_v46, %v235_v0  ;;  %v238_v56 = vsel %vm236_vm5, %v231_v54, %v233_v46  ;;  %v333_v54 = vsub.s32 6, %v844_v36  ;;  %v299_v0 = vrot.slane %v861_v50, %v290_v40 }
 0x145   :  { %v259_v29 = vmul.f32 %v252_v21, %v238_v56  ;;  %v260_v59 = vmul.f32 %v256_v28, %v237_v55  ;;  %462 = vmatprep.subr.bf16.mxu0 %v266_v48  ;;  %v311_v21 = vmul.f32 %v303_v2, %v838_v32  ;;  %v377_v56 = vrot.slane %v853_v45, %v376_v33 }
 0x146   :  { %463 = vmatpush1.bf16.msra.mxu0 %v265_v51  ;;  %v346_v23 = vrot.slane %v859_v49, %v333_v54  ;;  %v310_v27 = vmul.f32 %v299_v0, %v838_v32  ;;  %v338_v15 = vrot.slane %v849_v41, %v333_v54  ;;  %v342_v1 = vrot.slane %v861_v50, %v333_v54 }
 0x147   :  { %v278_v60 = vpop.permute.xlu1 %277  ;;  %581 = vmatprep.subr.msk.bf16.mxu0 %vm928_vm7, %v580_v31  ;;  %v321_v61 = vpop.permute.xlu0 %320  ;;  %v268_v62 = vpack.c.bf16 %v264_v52, %v260_v59  ;;  %v267_v63 = vpack.c.bf16 %v263_v53, %v259_v29  ;;  %v334_v30 = vrot.slane %v853_v45, %v333_v54  ;;  %v381_v52 = vrot.slane %v849_v41, %v376_v33 }
 0x148   :  { %v285_v3 = vsel %vm283_vm8, %v278_v60, %v280_v47  ;;  %v286_v14 = vsel %vm283_vm8, %v274_v24, %v278_v60  ;;  %v354_v40 = vmul.f32 %v346_v23, %v840_v34  ;;  %v352_v46 = vmul.f32 %v338_v15, %v840_v34 }
 0x149   :  { %v304_v5 = vmul.f32 %v291_v57, %v286_v14  ;;  %v305_v6 = vmul.f32 %v295_v44, %v285_v3  ;;  %503 = vmatprep.subr.bf16.mxu1 %v268_v62  ;;  %v351_v57 = vmul.f32 %v334_v30, %v840_v34  ;;  %v385_v31 = vrot.slane %v861_v50, %v376_v33 }
 0x14a   :  { %584 = vmatpush1.bf16.msk.msra.mxu0 %vm928_vm7, %v583_v20  ;;  %504 = vmatpush1.bf16.msra.mxu1 %v267_v63  ;;  %v389_v54 = vrot.slane %v859_v49, %v376_v33  ;;  %v395_v62 = vmul.f32 %v381_v52, %v842_v35 }
 0x14b   :  { %v282_v10 = vpop.permute.xlu1 %281  ;;  %588 = vmatprep.subr.msk.bf16.mxu1 %vm928_vm7, %v587_v4  ;;  %v325_v13 = vpop.permute.xlu0 %324  ;;  %v313_v17 = vpack.c.bf16 %v309_v8, %v305_v6  ;;  %v312_v19 = vpack.c.bf16 %v308_v9, %v304_v5  ;;  %v396_v6 = vmul.f32 %v385_v31, %v842_v35 }
 0x14c   :  { %v284_v11 = vsel %vm283_vm8, %v280_v47, %v282_v10  ;;  %v287_v12 = vsel %vm283_vm8, %v282_v10, %v274_v24  ;;  %v353_v47 = vmul.f32 %v342_v1, %v840_v34  ;;  %v394_v34 = vmul.f32 %v377_v56, %v842_v35 }
 0x14d   :  { %v306_v22 = vmul.f32 %v299_v0, %v284_v11  ;;  %v307_v25 = vmul.f32 %v303_v2, %v287_v12  ;;  %466 = vmatprep.subr.bf16.mxu0 %v313_v17  ;;  %v397_v5 = vmul.f32 %v389_v54, %v842_v35  ;;  %v573_v17 = vld [vmem:[#allocation4 + $0x20] ss:$0 sm:$0xff] }
 0x14e   :  { %467 = vmatpush1.bf16.msra.mxu0 %v312_v19  ;;  %591 = vmatpush1.bf16.msk.msra.mxu1 %vm928_vm7, %v590_v16  ;;  %v574_v16 = vld [vmem:[#allocation4 + $0x28] ss:$0 sm:$0xff] }
 0x14f   :  { %v317_v28 = vpop.permute.xlu1 %316  ;;  %v315_v7 = vpack.c.bf16 %v311_v21, %v307_v25  ;;  %v314_v24 = vpack.c.bf16 %v310_v27, %v306_v22  ;;  %v360_v39 = vpop.permute.xlu0 %359  ;;  %v575_v21 = vld [vmem:[#allocation4 + $0x30] ss:$0 sm:$0xff] }
 0x150   :  { %v330_v18 = vsel %vm326_vm9, %v325_v13, %v317_v28  ;;  %v329_v38 = vsel %vm326_vm9, %v317_v28, %v321_v61 }
 0x151   :  { %v350_v32 = vmul.f32 %v346_v23, %v330_v18  ;;  %507 = vmatprep.subr.bf16.mxu1 %v315_v7  ;;  %v347_v48 = vmul.f32 %v334_v30, %v329_v38  ;;  %v576_v23 = vld [vmem:[#allocation4 + $0x38] ss:$0 sm:$0xff] }
 0x152   :  { %508 = vmatpush1.bf16.msra.mxu1 %v314_v24 }
 0x153   :  { %v323_v42 = vpop.permute.xlu1 %322  ;;  %v358_v43 = vpack.c.bf16 %v354_v40, %v350_v32  ;;  %v366_v44 = vpop.permute.xlu0 %365  ;;  %v577_v40 = vcombine.low %v827_v26, %v827_v26 }
 0x154   :  { %v327_v36 = vsel %vm326_vm9, %v323_v42, %v325_v13  ;;  %v328_v51 = vsel %vm326_vm9, %v321_v61, %v323_v42  ;;  %v355_v61 = vpack.c.bf16 %v351_v57, %v347_v48 }
 0x155   :  { %v348_v53 = vmul.f32 %v338_v15, %v328_v51  ;;  %v349_v55 = vmul.f32 %v342_v1, %v327_v36  ;;  %509 = vmatprep.subr.bf16.mxu1 %v358_v43 }
 0x157   :  { %v364_v58 = vpop.permute.xlu1 %363  ;;  %v356_v29 = vpack.c.bf16 %v352_v46, %v348_v53  ;;  %v357_v59 = vpack.c.bf16 %v353_v47, %v349_v55  ;;  %v407_v14 = vpop.permute.xlu0 %406 }
 0x158   :  { %v371_v41 = vsel %vm369_vm10, %v364_v58, %v366_v44  ;;  %v372_v60 = vsel %vm369_vm10, %v360_v39, %v364_v58 }
 0x159   :  { %v390_v45 = vmul.f32 %v377_v56, %v372_v60  ;;  %v391_v63 = vmul.f32 %v381_v52, %v371_v41  ;;  %468 = vmatprep.subr.bf16.mxu0 %v356_v29  ;;  %510 = vmatpush1.bf16.msra.mxu1 %v357_v59 }
 0x15a   :  { %469 = vmatpush1.bf16.msra.mxu0 %v355_v61 }
 0x15b   :  { %v368_v0 = vpop.permute.xlu1 %367  ;;  %v399_v50 = vpack.c.bf16 %v395_v62, %v391_v63  ;;  %v398_v2 = vpack.c.bf16 %v394_v34, %v390_v45  ;;  %v411_v13 = vpop.permute.xlu0 %410 }
 0x15c   :  { %v370_v49 = vsel %vm369_vm10, %v366_v44, %v368_v0  ;;  %v373_v3 = vsel %vm369_vm10, %v368_v0, %v360_v39 }
 0x15d   :  { %v392_v20 = vmul.f32 %v385_v31, %v370_v49  ;;  %v393_v4 = vmul.f32 %v389_v54, %v373_v3  ;;  %470 = vmatprep.subr.bf16.mxu0 %v399_v50 }
 0x15e   :  { %471 = vmatpush1.bf16.msra.mxu0 %v398_v2 }
 0x15f   :  { %v403_v8 = vpop.permute.xlu1 %402  ;;  %v401_v9 = vpack.c.bf16 %v397_v5, %v393_v4  ;;  %v400_v10 = vpack.c.bf16 %v396_v6, %v392_v20 }
 0x160   :  { %v415_v11 = vsel %vm412_vm11, %v403_v8, %v407_v14  ;;  %v416_v12 = vsel %vm412_vm11, %v411_v13, %v403_v8 }
 0x161   :  { %511 = vmatprep.subr.bf16.mxu1 %v401_v9  ;;  %v433_v27 = vmul.f32 %v573_v17, %v415_v11  ;;  %v436_v35 = vmul.f32 %v576_v23, %v416_v12 }
 0x162   :  { %512 = vmatpush1.bf16.msra.mxu1 %v400_v10 }
 0x163   :  { %v409_v19 = vpop.permute.xlu1 %408 }
 0x164   :  { %v413_v22 = vsel %vm412_vm11, %v409_v19, %v411_v13  ;;  %v414_v25 = vsel %vm412_vm11, %v407_v14, %v409_v19 }
 0x165   :  { %v434_v28 = vmul.f32 %v574_v16, %v414_v25  ;;  %v435_v7 = vmul.f32 %v575_v21, %v413_v22 }
 0x167   :  { %v405_v24 = vpop.permute.xlu1 %404 }
 0x168   :  { %v437_v15 = vmul.f32 %v573_v17, %v405_v24  ;;  %v438_v1 = vmul.f32 %v574_v16, %v405_v24  ;;  %v439_v37 = vmul.f32 %v575_v21, %v405_v24  ;;  %v440_v18 = vmul.f32 %v576_v23, %v405_v24 }
 0x16a   :  { %v442_v33 = vpack.c.bf16 %v438_v1, %v434_v28  ;;  %v444_v38 = vpack.c.bf16 %v440_v18, %v436_v35  ;;  %v441_v32 = vpack.c.bf16 %v437_v15, %v433_v27  ;;  %v443_v39 = vpack.c.bf16 %v439_v37, %v435_v7 }
 0x16c   :  { %472 = vmatprep.subr.bf16.mxu0 %v442_v33  ;;  %513 = vmatprep.subr.bf16.mxu1 %v444_v38 }
 0x16d   :  { %473 = vmatpush1.bf16.msra.mxu0 %v441_v32  ;;  %514 = vmatpush1.bf16.msra.mxu1 %v443_v39 }
 0x170   :  { %489 = vmatmul.mubr.bf16.vlgmr.msra.gmra.mrb[0].mxu0 %v577_v40  ;;  %530 = vmatmul.mubr.bf16.vlgmr.msra.gmra.mrb[0].mxu1 %v577_v40 }
 0x243   :  { %v490_v30 = vpop.f32.mrb[0].mxu0  ;;  %v531_v42 = vpop.f32.mrb[0].mxu1 }
 0x244   :  { %v542_v43 = vrot.slane %v490_v30, 4  ;;  %v559_v46 = vrot.slane %v531_v42, 4  ;;  %v492_v47 = vpop.f32.mrb[1].mxu0  ;;  %v533_v48 = vpop.f32.mrb[1].mxu1 }
 0x245   :  { %v543_v36 = vrot.slane %v492_v47, 4  ;;  %v560_v51 = vrot.slane %v533_v48, 4  ;;  %v494_v52 = vpop.f32.mrb[2].mxu0  ;;  %v535_v53 = vpop.f32.mrb[2].mxu1 }
 0x246   :  { %546 = vst [vmem:[%s1023_s5 + $0x10] ss:$-12 sps:$4 sm:$0xff] %v542_v43   ;;  %595 = vst [vmem:[%s1023_s5 + $0x30] ss:$-12 sps:$4 sm:$0xff] %v559_v46   ;;  %v495_v26 = vpop.f32.mrb[3].mxu0  ;;  %v536_v55 = vpop.f32.mrb[3].mxu1 }
 0x247   :  { %547 = vst [vmem:[%s1023_s5 + $0x18] ss:$-12 sps:$4 sm:$0xff] %v543_v36   ;;  %596 = vst [vmem:[%s1023_s5 + $0x38] ss:$-12 sps:$4 sm:$0xff] %v560_v51  }
 0x248   :  { %571 = vsyncpa [#allocation3], 1 }
 0x249   :  { %572 = vsyncpa [#allocation5], 1 }

</bundles_post_ra>
